<compile_context>
chip_gen: v7x
topology: tpu7x:2x2x1
jax: 0.10.0
libtpu: 0.0.40
codegen_flags: <defaults>
</compile_context>

<pallas_src>
import functools

import jax
import jax.numpy as jnp
from jax.experimental import pallas as pl
from jax.experimental.pallas import tpu as pltpu


def _actlog_kernel(x_ref, o_ref, *, eps):
    # Widen to f32 for the clamp+log (matches torch's float eps; v5e has no
    # bf16 EUP path).  torch.clamp(x, min=eps) == maximum(x, eps).
    xf = x_ref[...].astype(jnp.float32)
    o_ref[...] = jnp.log(jnp.maximum(xf, jnp.float32(eps))).astype(o_ref.dtype)


_TARGET_BLOCK_BYTES = 6 * 1024 * 1024    # per-block footprint target
_VMEM_LIMIT_BYTES = 48 * 1024 * 1024     # < v7x's 64 MiB physical VMEM
_MEGACORE_MIN_BYTES = 2 * 1024 * 1024    # only force >=2 blocks above this
_FALLBACK_BLOCK_LANES = 32 * 1024        # ragged-n fallback: (1, 32768) blocks

_COMPILER_PARAMS = pltpu.CompilerParams(
    dimension_semantics=("parallel",),
    vmem_limit_bytes=_VMEM_LIMIT_BYTES,
)


def act_log(x, eps=1e-06, *, donate_input=False):
    """Elementwise log(clamp(x, min=eps)); matches torch ActLog semantics/dtype."""
    orig_shape = x.shape
    dtype = x.dtype
    n = x.size
    itemsize = jnp.dtype(dtype).itemsize
    kernel = functools.partial(_actlog_kernel, eps=float(eps))
    io_alias = {0: 0} if donate_input else {}

    flat = x.reshape(-1)  # free on a contiguous array

    # ---- Common path: lane-dense 2-D view (rows, width), width | n, width % 128 == 0.
    candidates = [w for w in (1024, 512, 256, 128) if n % w == 0]
    if candidates:
        # Prefer the widest lane dim that still gives >= 8 rows (full sublanes);
        # for tiny tensors fall back to the narrowest divisor.
        width = next((w for w in candidates if n // w >= 8), candidates[-1])
        rows = n // width
        x2 = flat.reshape(rows, width)

        packing = max(8, 32 // itemsize)      # sublane packing for this dtype
        bytes_per_row = width * itemsize
        if rows <= packing:
            block_rows = rows                 # full second-to-last dim: always legal
        else:
            target_rows = max(packing, _TARGET_BLOCK_BYTES // bytes_per_row)
            block_rows = max(packing, (min(rows, target_rows) // packing) * packing)
            # Give v7x's two TensorCores something to split when there's enough work.
            if (pl.cdiv(rows, block_rows) < 2
                    and rows * bytes_per_row >= _MEGACORE_MIN_BYTES):
                block_rows = pl.cdiv(pl.cdiv(rows, 2), packing) * packing

        out2 = pl.pallas_call(
            kernel,
            out_shape=jax.ShapeDtypeStruct((rows, width), dtype),
            grid=(pl.cdiv(rows, block_rows),),        # ragged last block -> masked
            in_specs=[pl.BlockSpec((block_rows, width), lambda i: (i, 0))],
            out_specs=pl.BlockSpec((block_rows, width), lambda i: (i, 0)),
            compiler_params=_COMPILER_PARAMS,
            input_output_aliases=io_alias,
        )(x2)
        return out2.reshape(orig_shape)

    # ---- Rare fallback (n % 128 != 0): (1, n) view blocked along lanes.
    #      No padding / slicing passes; the ragged last block is masked on store.
    x2 = flat.reshape(1, n)
    block_lanes = n if n <= _FALLBACK_BLOCK_LANES else _FALLBACK_BLOCK_LANES
    out2 = pl.pallas_call(
        kernel,
        out_shape=jax.ShapeDtypeStruct((1, n), dtype),
        grid=(pl.cdiv(n, block_lanes),),
        in_specs=[pl.BlockSpec((1, block_lanes), lambda i: (0, i))],
        out_specs=pl.BlockSpec((1, block_lanes), lambda i: (0, i)),
        compiler_params=_COMPILER_PARAMS,
        input_output_aliases=io_alias,
    )(x2)
    return out2.reshape(orig_shape)


if __name__ == "__main__":
    key = jax.random.PRNGKey(0)
    # Small NCHW input consistent with EEGNet-style activations.
    x = jax.random.normal(key, (2, 4, 16, 16), dtype=jnp.float32)

    y = jax.block_until_ready(act_log(x, eps=1e-06))

    # Pure-JAX reference (torch clamp(min=eps) == maximum).
    y_ref = jnp.log(jnp.maximum(x, 1e-06))
    assert y.shape == x.shape and y.dtype == x.dtype
    assert jnp.allclose(y, y_ref, atol=1e-6, rtol=1e-6)

    print("KERNEL_OK")
</pallas_src>

<mosaic_0001>
module attributes {stable_mosaic.version = 11 : i64} {
  func.func @_actlog_kernel(%arg0: i32, %arg1: memref<8x256xf32, #tpu.memory_space<vmem>>, %arg2: memref<8x256xf32, #tpu.memory_space<vmem>>) attributes {dimension_semantics = [#tpu.dimension_semantics<parallel>], iteration_bounds = array<i64: 1>, scalar_prefetch = 0 : i64, scratch_operands = 0 : i64, tpu.core_type = #tpu.core_type<tc>, window_params = [{transform_indices = @transform_0, window_bounds = array<i64: 8, 256>}, {transform_indices = @transform_1, window_bounds = array<i64: 8, 256>}]} {
    %c0 = arith.constant 0 : index
    %c0_0 = arith.constant 0 : index
    %0 = vector.load %arg1[%c0, %c0_0] : memref<8x256xf32, #tpu.memory_space<vmem>>, vector<8x256xf32>
    %cst = arith.constant 9.99999997E-7 : f32
    %1 = vector.broadcast %cst : f32 to vector<8x256xf32>
    %2 = arith.maximumf %0, %1 : vector<8x256xf32>
    %3 = math.log %2 : vector<8x256xf32>
    %c0_1 = arith.constant 0 : index
    %c0_2 = arith.constant 0 : index
    %4 = vector.load %arg2[%c0_1, %c0_2] : memref<8x256xf32, #tpu.memory_space<vmem>>, vector<8x256xf32>
    tpu.vector_store %arg2[%c0_1, %c0_2], %3 {strides = array<i32>} : memref<8x256xf32, #tpu.memory_space<vmem>>, vector<8x256xf32>,
    return
  }
  func.func @transform_0(%arg0: i32) -> (i32, i32) {
    %c0_i32 = arith.constant 0 : i32
    %c0_i32_0 = arith.constant 0 : i32
    return %arg0, %c0_i32 : i32, i32
  }
  func.func @transform_1(%arg0: i32) -> (i32, i32) {
    %c0_i32 = arith.constant 0 : i32
    %c0_i32_0 = arith.constant 0 : i32
    return %arg0, %c0_i32 : i32, i32
  }
}

</mosaic_0001>

<bundles_post_ra>
// kernel: tpu_custom_call.1
= control target key start
LH: loop header
LB: loop body
LE: loop exit
PB: predicated region body
PF: predicated region fallthrough
CT: control target
= control target key end

     0   :  { %6 = vsyncpa [#allocation3], 0  ;;  %s136_s0 = inlined_call_operand.hbm [shape: f32[8,256], index: 0, kind: input, shape index: {}]   ;;  %s137_s1 = inlined_call_operand.hbm [shape: f32[8,256], index: 1, kind: output, shape index: {}]  }
   0x1   :  { %7 = vsyncpa [#allocation4], 0  ;;  %s100_s6 = smov [#allocation2]   ;;  %s52_s10 = scalar_lea.hbm %s136_s0, 256 }
   0x2   :  { %s14_s7 = sshll.u32 %s100_s6, 4  ;;  %p53_p0 = scmp.ne.s32.totalorder %s136_s0, %s52_s10  ;;  %s15_s7 = int_to_ptr.vmem [resolvable:$true] %s14_s7 }
   0x3   :  { %p56_p1 = scmp.lt.u32.totalorder %s52_s10, %s136_s0 }
   0x5   :  { %p58_p2 = pnand %p56_p1, %p53_p0 }
   0x7   :  { %61 = shalt.err (!%p58_p2)
}
   0x8   :  { %s62_s15 = scalar_lea.vmem %s15_s7, 256  ;;  %p67_p4 = scmp.lt.s32.totalorder %s15_s7, %s15_s7 }
   0x9   :  { %p63_p3 = scmp.ne.s32.totalorder %s15_s7, %s62_s15  ;;  %p68_p5 = scmp.lt.s32.totalorder %s62_s15, %s62_s15 }
   0xb   :  { %p69_p6 = por %p68_p5, %p67_p4 }
   0xd   :  { %p70_p7 = pnand %p69_p6, %p63_p3 }
   0xf   :  { %73 = shalt.err (!%p70_p7)
}
  0x10   :  { %17 = dma.hbm_to_vmem [thread:$0]  %s136_s0, 256, %s15_s7, [#allocation3]  }
  0x11   :  { %96 = dma.done.wait [#allocation3], 256  }
  0x12   :  { %97 = vsyncadd [#allocation3], 4294967040  ;;  %v21_v0 = vld [vmem:[#allocation2] sm:$0xff]  ;;  %v22_v1 = vld [vmem:[#allocation2 + $0x8] sm:$0xff]  ;;  %s101_s18 = smov [#allocation5]  }
  0x13   :  { %v23_v2 = vmax.f32 %v21_v0, 1e-06  ;;  %v24_v3 = vmax.f32 %v22_v1, 1e-06  ;;  %s37_s19 = sshll.u32 %s101_s18, 4  ;;  %s38_s19 = int_to_ptr.vmem [resolvable:$true] %s37_s19 }
  0x14   :  { %s74_s20 = scalar_lea.vmem %s38_s19, 256  ;;  %p79_p9 = scmp.lt.s32.totalorder %s38_s19, %s38_s19 }
  0x15   :  { %48 = vlog2.f32 %v23_v2  ;;  %p75_p8 = scmp.ne.s32.totalorder %s38_s19, %s74_s20  ;;  %p80_p10 = scmp.lt.s32.totalorder %s74_s20, %s74_s20 }
  0x16   :  { %50 = vlog2.f32 %v24_v3 }
  0x17   :  { %p81_p11 = por %p80_p10, %p79_p9 }
  0x19   :  { %p82_p12 = pnand %p81_p11, %p75_p8 }
  0x1f   :  { %v49_v4 = vpop.eup %48 }
  0x20   :  { %v51_v5 = vpop.eup %50  ;;  %v26_v6 = vmul.f32 0.6931472, %v49_v4 }
  0x21   :  { %v28_v7 = vmul.f32 0.6931472, %v51_v5 }
  0x22   :  { %29 = vst [vmem:[#allocation5] sm:$0xff] %v26_v6 }
  0x23   :  { %30 = vst [vmem:[#allocation5 + $0x8] sm:$0xff] %v28_v7 }
  0x24   :  { %85 = shalt.err (!%p82_p12)
}
  0x25   :  { %s86_s22 = scalar_lea.hbm %s137_s1, 256 }
  0x26   :  { %p87_p13 = scmp.ne.s32.totalorder %s137_s1, %s86_s22  ;;  %p90_p0 = scmp.lt.u32.totalorder %s86_s22, %s137_s1 }
  0x28   :  { %p92_p1 = pnand %p90_p0, %p87_p13 }
  0x2a   :  { %95 = shalt.err (!%p92_p1)
}
  0x2b   :  { %40 = dma.vmem_to_hbm [thread:$0]  %s38_s19, 256, %s137_s1, [#allocation4]  }
  0x2c   :  { %98 = dma.done.wait [#allocation4], 256  }
  0x2d   :  { %99 = vsyncadd [#allocation4], 4294967040 }
  0x2e   :  { %44 = vsyncpa [#allocation3], 1 }
  0x2f   :  { %45 = vsyncpa [#allocation4], 1 }

</bundles_post_ra>
